<compile_context>
chip_gen: v6e
topology: v6e:2x2x1
jax: 0.10.0
libtpu: 0.0.40
codegen_flags: <defaults>
</compile_context>

<pallas_src>
import math
import functools

import jax
import jax.numpy as jnp
from jax.experimental import pallas as pl
from jax.experimental.pallas import tpu as pltpu


_TILE_CAP = 2048     # rows per batch tile: ~6 MiB live f32 VMEM, fits v5e's 16 MiB scope
_SPLIT_MIN = 1024    # once B >= this, force >= 2 grid steps for v7x's 2 TensorCores


def _round_up(x, m):
    return (x + m - 1) // m * m


def _cdiv(a, b):
    return -(-a // b)


def _elu(x):
    # ELU(alpha=1).  Negative branch is expm1(x); computed with a guarded
    # Taylor form (x + x^2/2 for |x| < 1e-3) so only exp is needed in the
    # Mosaic lowering while matching torch ELU's expm1 precision near zero.
    em1 = jnp.where(jnp.abs(x) < 1e-3, x + 0.5 * x * x, jnp.exp(x) - 1.0)
    return jnp.where(x > 0, x, em1)


def _default_batch_tile(B):
    """Pick the batch tile: minimal padding, VMEM-capped, v7x 2-TC friendly."""
    B = int(B)
    Bp = _round_up(B, 128)
    n_tiles = _cdiv(Bp, _TILE_CAP)
    if Bp >= _SPLIT_MIN:
        n_tiles = max(n_tiles, 2)          # let dimension_semantics=("parallel",)
                                           # actually use both v7x TensorCores
    if n_tiles == 1:
        return _round_up(B, 8)             # single tile: sublane-align only, no 128-pad
    return _round_up(_cdiv(Bp, n_tiles), 128)


# ---------------------------------------------------------------------------
# Kernel
# ---------------------------------------------------------------------------
def critic_kernel(s_ref, a_ref, w1_ref, b1_ref, w2s_ref, w2a_ref, b2_ref,
                  w3_ref, b3_ref, o_ref):
    # Layer 1: fcs1 + ELU.  f32 MXU matmul, K = full_state_size (48, 8-aligned).
    xs = jnp.dot(s_ref[...], w1_ref[...],
                 preferred_element_type=jnp.float32) + b1_ref[...]
    xs = _elu(xs)

    # Layer 2: fc2 on concat(xs, action), folded (no in-kernel concat copy):
    #   concat(xs, a) @ W2^T == xs @ W2s + a @ W2a
    # The K=4 action part is 4 statically-unrolled VPU rank-1 updates rather
    # than a sub-sublane MXU dot.
    h = jnp.dot(xs, w2s_ref[...], preferred_element_type=jnp.float32)
    a = a_ref[...]                       # (TB, A) f32
    w2a = w2a_ref[...]                   # (A, H2) f32
    for j in range(a.shape[1]):          # A is static (4)
        h = h + a[:, j:j + 1] * w2a[j:j + 1, :]
    h = _elu(h + b2_ref[...])

    # Layer 3 head, emitted lane-dense: q[o, b] = sum_h W3[o, h] * h[b, h].
    # W3 is zero-padded to 8 output rows so the MXU M-dim is sublane aligned;
    # only row 0 is live and stored.  Output block is (1, TB) -> full-width
    # unmasked stores instead of a lane-sparse (TB, 1) column.
    q = jnp.einsum('oh,bh->ob', w3_ref[...], h,
                   preferred_element_type=jnp.float32)      # (8, TB)
    o_ref[...] = q[0:1, :] + b3_ref[0, 0]


# ---------------------------------------------------------------------------
# Wrapper
# ---------------------------------------------------------------------------
@functools.partial(jax.jit, static_argnames=("batch_tile",))
def critic_forward(full_state, full_action, kernel_params, *, batch_tile=None):
    """Critic forward pass: Q = fc3(ELU(fc2(concat(ELU(fcs1(s)), a))))."""
    B, S = full_state.shape
    A = full_action.shape[1]
    w1, b1, w2s, w2a, b2, w3, b3 = kernel_params
    H1 = w1.shape[1]
    H2 = w2s.shape[1]
    assert w1.shape[0] == S and w2a.shape[0] == A

    TB = int(batch_tile) if batch_tile is not None else _default_batch_tile(B)
    TB = _round_up(TB, 8)
    if _round_up(B, TB) > TB:
        # Multi-tile grid: the lane-dense (1, TB) output block needs TB % 128 == 0.
        TB = _round_up(TB, 128)
    Bp = _round_up(B, TB)

    # Only the ragged batch remainder is zero-padded (raw f32, no lane slab,
    # no bf16 cast) -- a no-op for batch sizes divisible by the tile.
    state = full_state.astype(jnp.float32)
    action = full_action.astype(jnp.float32)
    if Bp != B:
        state = jnp.pad(state, ((0, Bp - B), (0, 0)))
        action = jnp.pad(action, ((0, Bp - B), (0, 0)))

    grid = (Bp // TB,)
    out = pl.pallas_call(
        critic_kernel,
        out_shape=jax.ShapeDtypeStruct((1, Bp), jnp.float32),
        grid=grid,
        in_specs=[
            pl.BlockSpec((TB, S), lambda i: (i, 0)),            # state  (f32)
            pl.BlockSpec((TB, A), lambda i: (i, 0)),            # action (f32)
            # Constant index_maps: weights/biases stay resident in VMEM across
            # grid steps (Pallas skips the DMA when the block index repeats).
            pl.BlockSpec((S, H1), lambda i: (0, 0)),            # W1^T
            pl.BlockSpec((1, H1), lambda i: (0, 0)),            # b1
            pl.BlockSpec((H1, H2), lambda i: (0, 0)),           # W2^T state rows
            pl.BlockSpec((A, H2), lambda i: (0, 0)),            # W2^T action rows
            pl.BlockSpec((1, H2), lambda i: (0, 0)),            # b2
            pl.BlockSpec((8, H2), lambda i: (0, 0)),            # W3 (8-row padded)
            pl.BlockSpec(memory_space=pltpu.MemorySpace.SMEM),  # b3 scalar
        ],
        out_specs=pl.BlockSpec((1, TB), lambda i: (0, i)),      # lane-dense Q row
        compiler_params=pltpu.CompilerParams(
            dimension_semantics=("parallel",),
            # Explicit scoped-VMEM headroom so the tile cap stays portable
            # across v5e (16 MiB default) / v6e / v7x.
            vmem_limit_bytes=32 * 1024 * 1024,
        ),
    )(state, action, w1, b1, w2s, w2a, b2, w3, b3)

    # (1, Bp) and (Bp, 1) share the same memory order: free reshape + slice.
    return jnp.reshape(out, (Bp, 1))[:B]


# ---------------------------------------------------------------------------
# Parameters (PyTorch layout init + kernel-layout packing)
# ---------------------------------------------------------------------------
def init_critic_params(key, full_state_size, full_action_size,
                       fcs1_units=256, fc2_units=128):
    """Mirror the PyTorch module: weights [out, in], biases [out].

    reset_parameters(): weights ~ U(+-1/sqrt(weight.size(0))) == 1/sqrt(out)
    (the hidden_init quirk), fc3.weight ~ U(-3e-3, 3e-3).  Biases keep the
    PyTorch Linear default U(+-1/sqrt(in_features)).
    """
    k = jax.random.split(key, 6)

    def u(kk, shape, lim):
        return jax.random.uniform(kk, shape, jnp.float32, -lim, lim)

    S, A = full_state_size, full_action_size
    w1 = u(k[0], (fcs1_units, S), 1.0 / math.sqrt(fcs1_units))
    w2 = u(k[1], (fc2_units, fcs1_units + A), 1.0 / math.sqrt(fc2_units))
    w3 = u(k[2], (1, fc2_units), 3e-3)
    b1 = u(k[3], (fcs1_units,), 1.0 / math.sqrt(S))
    b2 = u(k[4], (fc2_units,), 1.0 / math.sqrt(fcs1_units + A))
    b3 = u(k[5], (1,), 1.0 / math.sqrt(fc2_units))
    return (w1, b1, w2, b2, w3, b3)


def pack_params(w1, b1, w2, b2, w3, b3, full_state_size, full_action_size):
    """Torch-layout f32 params -> kernel-layout f32 params.

    W1/W2 are transposed to (in, out); W2 is split into its xs rows and action
    rows (so fc2 needs no concat); W3 is zero-padded to 8 output rows for an
    MXU-sublane-aligned head; b3 becomes a (1,1) SMEM scalar.
    """
    S, A = full_state_size, full_action_size
    H1, H2 = w1.shape[0], w2.shape[0]

    w1_t = jnp.asarray(w1, jnp.float32).T                      # (S, H1)
    b1_r = jnp.asarray(b1, jnp.float32).reshape(1, H1)

    w2_t = jnp.asarray(w2, jnp.float32).T                      # (H1 + A, H2)
    w2s = w2_t[:H1]                                            # (H1, H2)
    w2a = w2_t[H1:H1 + A]                                      # (A, H2)
    b2_r = jnp.asarray(b2, jnp.float32).reshape(1, H2)

    w3_8 = jnp.zeros((8, H2), jnp.float32).at[0].set(jnp.asarray(w3, jnp.float32)[0])
    b3_r = jnp.asarray(b3, jnp.float32).reshape(1, 1)

    return (w1_t, b1_r, w2s, w2a, b2_r, w3_8, b3_r)


# ---------------------------------------------------------------------------
# Reference (pure JAX, mirrors the PyTorch forward)
# ---------------------------------------------------------------------------
def critic_reference(full_state, full_action, torch_params):
    w1, b1, w2, b2, w3, b3 = torch_params
    hp = jax.lax.Precision.HIGHEST
    elu = lambda v: jnp.where(v > 0, v, jnp.expm1(v))
    xs = elu(jnp.dot(full_state, w1.T, precision=hp) + b1)
    x = jnp.concatenate([xs, full_action], axis=1)
    x = elu(jnp.dot(x, w2.T, precision=hp) + b2)
    return jnp.dot(x, w3.T, precision=hp) + b3


# ---------------------------------------------------------------------------
# Demo / self-test
# ---------------------------------------------------------------------------
if __name__ == "__main__":
    # MADDPG tennis: 2 agents x 24 obs, 2 agents x 2 actions.
    full_state_size = 48
    full_action_size = 4

    key = jax.random.PRNGKey(0)
    kp, ks, ka, ks2, ka2 = jax.random.split(key, 5)

    torch_params = init_critic_params(kp, full_state_size, full_action_size)
    kparams = pack_params(*torch_params, full_state_size, full_action_size)

    # Small batch: single 8-row tile, zero padding.
    B = 8
    state = jax.random.normal(ks, (B, full_state_size), jnp.float32)
    action = jax.random.uniform(ka, (B, full_action_size), jnp.float32,
                                -1.0, 1.0)
    q = jax.block_until_ready(critic_forward(state, action, kparams))
    assert q.shape == (B, 1)
    q_ref = critic_reference(state, action, torch_params)
    assert jnp.allclose(q, q_ref, atol=1e-3, rtol=1e-3), (
        f"small-batch mismatch, max|d|={jnp.max(jnp.abs(q - q_ref))}")

    # Larger batch, default tiling: single 600-row tile, zero batch padding.
    B2 = 600
    state2 = jax.random.normal(ks2, (B2, full_state_size), jnp.float32)
    action2 = jax.random.uniform(ka2, (B2, full_action_size), jnp.float32,
                                 -1.0, 1.0)
    q2 = jax.block_until_ready(critic_forward(state2, action2, kparams))
    q2_ref = critic_reference(state2, action2, torch_params)
    assert q2.shape == (B2, 1)
    assert jnp.allclose(q2, q2_ref, atol=1e-3, rtol=1e-3), (
        f"default-tile mismatch, max|d|={jnp.max(jnp.abs(q2 - q2_ref))}")

    # Explicit 256-row tile: exercises the multi-tile grid + ragged batch pad.
    q3 = jax.block_until_ready(
        critic_forward(state2, action2, kparams, batch_tile=256))
    assert q3.shape == (B2, 1)
    assert jnp.allclose(q3, q2_ref, atol=1e-3, rtol=1e-3), (
        f"multi-tile mismatch, max|d|={jnp.max(jnp.abs(q3 - q2_ref))}")

    print("KERNEL_OK")
</pallas_src>

<mosaic_0001>
module attributes {stable_mosaic.version = 11 : i64} {
  func.func @critic_kernel(%arg0: i32, %arg1: memref<8x48xf32, #tpu.memory_space<vmem>>, %arg2: memref<8x4xf32, #tpu.memory_space<vmem>>, %arg3: memref<48x256xf32, #tpu.memory_space<vmem>>, %arg4: memref<1x256xf32, #tpu.memory_space<vmem>>, %arg5: memref<256x128xf32, #tpu.memory_space<vmem>>, %arg6: memref<4x128xf32, #tpu.memory_space<vmem>>, %arg7: memref<1x128xf32, #tpu.memory_space<vmem>>, %arg8: memref<8x128xf32, #tpu.memory_space<vmem>>, %arg9: memref<1x1xf32, #tpu.memory_space<smem>>, %arg10: memref<1x8xf32, #tpu.memory_space<vmem>>) attributes {dimension_semantics = [#tpu.dimension_semantics<parallel>], iteration_bounds = array<i64: 1>, scalar_prefetch = 0 : i64, scratch_operands = 0 : i64, tpu.core_type = #tpu.core_type<tc>, window_params = [{transform_indices = @transform_0, window_bounds = array<i64: 8, 48>}, {transform_indices = @transform_1, window_bounds = array<i64: 8, 4>}, {pipeline_mode = #tpu.pipeline_mode<synchronous>, transform_indices = @transform_2, window_bounds = array<i64: 48, 256>}, {pipeline_mode = #tpu.pipeline_mode<synchronous>, transform_indices = @transform_3, window_bounds = array<i64: 1, 256>}, {pipeline_mode = #tpu.pipeline_mode<synchronous>, transform_indices = @transform_4, window_bounds = array<i64: 256, 128>}, {pipeline_mode = #tpu.pipeline_mode<synchronous>, transform_indices = @transform_5, window_bounds = array<i64: 4, 128>}, {pipeline_mode = #tpu.pipeline_mode<synchronous>, transform_indices = @transform_6, window_bounds = array<i64: 1, 128>}, {pipeline_mode = #tpu.pipeline_mode<synchronous>, transform_indices = @transform_7, window_bounds = array<i64: 8, 128>}, {transform_indices = @transform_8, window_bounds = array<i64: 1, 1>}, {transform_indices = @transform_9, window_bounds = array<i64: 1, 8>}]} {
    %c0 = arith.constant 0 : index
    %c0_0 = arith.constant 0 : index
    %0 = vector.load %arg1[%c0, %c0_0] : memref<8x48xf32, #tpu.memory_space<vmem>>, vector<8x48xf32>
    %c0_1 = arith.constant 0 : index
    %c0_2 = arith.constant 0 : index
    %1 = vector.load %arg3[%c0_1, %c0_2] : memref<48x256xf32, #tpu.memory_space<vmem>>, vector<48x256xf32>
    %cst = arith.constant dense<0.000000e+00> : vector<8x256xf32>
    %2 = tpu.matmul %0, %1, %cst {dimension_numbers = #tpu.dot_dimension_numbers<[1], [0], [0], [1], [0, 0, 1, 1], [], []>} : vector<8x48xf32>, vector<48x256xf32>, vector<8x256xf32> -> vector<8x256xf32>
    %c0_3 = arith.constant 0 : index
    %c0_4 = arith.constant 0 : index
    %3 = vector.load %arg4[%c0_3, %c0_4] : memref<1x256xf32, #tpu.memory_space<vmem>>, vector<1x256xf32>
    %4 = vector.broadcast %3 : vector<1x256xf32> to vector<8x256xf32>
    %5 = arith.addf %2, %4 : vector<8x256xf32>
    %6 = math.absf %5 : vector<8x256xf32>
    %cst_5 = arith.constant 1.000000e-03 : f32
    %7 = vector.broadcast %cst_5 : f32 to vector<8x256xf32>
    %8 = arith.cmpf olt, %6, %7 : vector<8x256xf32>
    %cst_6 = arith.constant 5.000000e-01 : f32
    %9 = vector.broadcast %cst_6 : f32 to vector<8x256xf32>
    %10 = arith.mulf %9, %5 : vector<8x256xf32>
    %11 = arith.mulf %10, %5 : vector<8x256xf32>
    %12 = arith.addf %5, %11 : vector<8x256xf32>
    %13 = math.exp %5 : vector<8x256xf32>
    %cst_7 = arith.constant 1.000000e+00 : f32
    %14 = vector.broadcast %cst_7 : f32 to vector<8x256xf32>
    %15 = arith.subf %13, %14 : vector<8x256xf32>
    %16 = arith.select %8, %12, %15 : vector<8x256xi1>, vector<8x256xf32>
    %cst_8 = arith.constant 0.000000e+00 : f32
    %17 = vector.broadcast %cst_8 : f32 to vector<8x256xf32>
    %18 = arith.cmpf ogt, %5, %17 : vector<8x256xf32>
    %19 = arith.select %18, %5, %16 : vector<8x256xi1>, vector<8x256xf32>
    %c0_9 = arith.constant 0 : index
    %c0_10 = arith.constant 0 : index
    %20 = vector.load %arg5[%c0_9, %c0_10] : memref<256x128xf32, #tpu.memory_space<vmem>>, vector<256x128xf32>
    %cst_11 = arith.constant dense<0.000000e+00> : vector<8x128xf32>
    %21 = tpu.matmul %19, %20, %cst_11 {dimension_numbers = #tpu.dot_dimension_numbers<[1], [0], [0], [1], [0, 0, 1, 1], [], []>} : vector<8x256xf32>, vector<256x128xf32>, vector<8x128xf32> -> vector<8x128xf32>
    %c0_12 = arith.constant 0 : index
    %c0_13 = arith.constant 0 : index
    %22 = vector.load %arg2[%c0_12, %c0_13] : memref<8x4xf32, #tpu.memory_space<vmem>>, vector<8x4xf32>
    %c0_14 = arith.constant 0 : index
    %c0_15 = arith.constant 0 : index
    %23 = vector.load %arg6[%c0_14, %c0_15] : memref<4x128xf32, #tpu.memory_space<vmem>>, vector<4x128xf32>
    %24 = vector.extract_strided_slice %22 {offsets = [0, 0], sizes = [8, 1], strides = [1, 1]} : vector<8x4xf32> to vector<8x1xf32>
    %25 = vector.extract_strided_slice %23 {offsets = [0, 0], sizes = [1, 128], strides = [1, 1]} : vector<4x128xf32> to vector<1x128xf32>
    %26 = vector.broadcast %24 : vector<8x1xf32> to vector<8x128xf32>
    %27 = vector.broadcast %25 : vector<1x128xf32> to vector<8x128xf32>
    %28 = arith.mulf %26, %27 : vector<8x128xf32>
    %29 = arith.addf %21, %28 : vector<8x128xf32>
    %30 = vector.extract_strided_slice %22 {offsets = [0, 1], sizes = [8, 1], strides = [1, 1]} : vector<8x4xf32> to vector<8x1xf32>
    %31 = vector.extract_strided_slice %23 {offsets = [1, 0], sizes = [1, 128], strides = [1, 1]} : vector<4x128xf32> to vector<1x128xf32>
    %32 = vector.broadcast %30 : vector<8x1xf32> to vector<8x128xf32>
    %33 = vector.broadcast %31 : vector<1x128xf32> to vector<8x128xf32>
    %34 = arith.mulf %32, %33 : vector<8x128xf32>
    %35 = arith.addf %29, %34 : vector<8x128xf32>
    %36 = vector.extract_strided_slice %22 {offsets = [0, 2], sizes = [8, 1], strides = [1, 1]} : vector<8x4xf32> to vector<8x1xf32>
    %37 = vector.extract_strided_slice %23 {offsets = [2, 0], sizes = [1, 128], strides = [1, 1]} : vector<4x128xf32> to vector<1x128xf32>
    %38 = vector.broadcast %36 : vector<8x1xf32> to vector<8x128xf32>
    %39 = vector.broadcast %37 : vector<1x128xf32> to vector<8x128xf32>
    %40 = arith.mulf %38, %39 : vector<8x128xf32>
    %41 = arith.addf %35, %40 : vector<8x128xf32>
    %42 = vector.extract_strided_slice %22 {offsets = [0, 3], sizes = [8, 1], strides = [1, 1]} : vector<8x4xf32> to vector<8x1xf32>
    %43 = vector.extract_strided_slice %23 {offsets = [3, 0], sizes = [1, 128], strides = [1, 1]} : vector<4x128xf32> to vector<1x128xf32>
    %44 = vector.broadcast %42 : vector<8x1xf32> to vector<8x128xf32>
    %45 = vector.broadcast %43 : vector<1x128xf32> to vector<8x128xf32>
    %46 = arith.mulf %44, %45 : vector<8x128xf32>
    %47 = arith.addf %41, %46 : vector<8x128xf32>
    %c0_16 = arith.constant 0 : index
    %c0_17 = arith.constant 0 : index
    %48 = vector.load %arg7[%c0_16, %c0_17] : memref<1x128xf32, #tpu.memory_space<vmem>>, vector<1x128xf32>
    %49 = vector.broadcast %48 : vector<1x128xf32> to vector<8x128xf32>
    %50 = arith.addf %47, %49 : vector<8x128xf32>
    %51 = math.absf %50 : vector<8x128xf32>
    %cst_18 = arith.constant 1.000000e-03 : f32
    %52 = vector.broadcast %cst_18 : f32 to vector<8x128xf32>
    %53 = arith.cmpf olt, %51, %52 : vector<8x128xf32>
    %cst_19 = arith.constant 5.000000e-01 : f32
    %54 = vector.broadcast %cst_19 : f32 to vector<8x128xf32>
    %55 = arith.mulf %54, %50 : vector<8x128xf32>
    %56 = arith.mulf %55, %50 : vector<8x128xf32>
    %57 = arith.addf %50, %56 : vector<8x128xf32>
    %58 = math.exp %50 : vector<8x128xf32>
    %cst_20 = arith.constant 1.000000e+00 : f32
    %59 = vector.broadcast %cst_20 : f32 to vector<8x128xf32>
    %60 = arith.subf %58, %59 : vector<8x128xf32>
    %61 = arith.select %53, %57, %60 : vector<8x128xi1>, vector<8x128xf32>
    %cst_21 = arith.constant 0.000000e+00 : f32
    %62 = vector.broadcast %cst_21 : f32 to vector<8x128xf32>
    %63 = arith.cmpf ogt, %50, %62 : vector<8x128xf32>
    %64 = arith.select %63, %50, %61 : vector<8x128xi1>, vector<8x128xf32>
    %c0_22 = arith.constant 0 : index
    %c0_23 = arith.constant 0 : index
    %65 = vector.load %arg8[%c0_22, %c0_23] : memref<8x128xf32, #tpu.memory_space<vmem>>, vector<8x128xf32>
    "tpu.trace_start"() <{level = 10 : i32, message = "oh,bh->ob"}> : () -> ()
    %cst_24 = arith.constant dense<0.000000e+00> : vector<8x8xf32>
    %66 = tpu.matmul %65, %64, %cst_24 {dimension_numbers = #tpu.dot_dimension_numbers<[1], [1], [0], [0], [0, 0, 1, 0], [], []>} : vector<8x128xf32>, vector<8x128xf32>, vector<8x8xf32> -> vector<8x8xf32>
    "tpu.trace_stop"() : () -> ()
    %67 = vector.extract_strided_slice %66 {offsets = [0, 0], sizes = [1, 8], strides = [1, 1]} : vector<8x8xf32> to vector<1x8xf32>
    %c0_25 = arith.constant 0 : index
    %c0_26 = arith.constant 0 : index
    %68 = memref.load %arg9[%c0_25, %c0_26] : memref<1x1xf32, #tpu.memory_space<smem>>
    %69 = vector.broadcast %68 : f32 to vector<1x8xf32>
    %70 = arith.addf %67, %69 : vector<1x8xf32>
    %c0_27 = arith.constant 0 : index
    %c0_28 = arith.constant 0 : index
    %71 = vector.load %arg10[%c0_27, %c0_28] : memref<1x8xf32, #tpu.memory_space<vmem>>, vector<1x8xf32>
    tpu.vector_store %arg10[%c0_27, %c0_28], %70 {strides = array<i32>} : memref<1x8xf32, #tpu.memory_space<vmem>>, vector<1x8xf32>,
    return
  }
  func.func @transform_0(%arg0: i32) -> (i32, i32) {
    %c0_i32 = arith.constant 0 : i32
    %c0_i32_0 = arith.constant 0 : i32
    return %arg0, %c0_i32 : i32, i32
  }
  func.func @transform_1(%arg0: i32) -> (i32, i32) {
    %c0_i32 = arith.constant 0 : i32
    %c0_i32_0 = arith.constant 0 : i32
    return %arg0, %c0_i32 : i32, i32
  }
  func.func @transform_2(%arg0: i32) -> (i32, i32) {
    %c0_i32 = arith.constant 0 : i32
    %c0_i32_0 = arith.constant 0 : i32
    %c0_i32_1 = arith.constant 0 : i32
    return %c0_i32, %c0_i32_0 : i32, i32
  }
  func.func @transform_3(%arg0: i32) -> (i32, i32) {
    %c0_i32 = arith.constant 0 : i32
    %c0_i32_0 = arith.constant 0 : i32
    %c0_i32_1 = arith.constant 0 : i32
    return %c0_i32, %c0_i32_0 : i32, i32
  }
  func.func @transform_4(%arg0: i32) -> (i32, i32) {
    %c0_i32 = arith.constant 0 : i32
    %c0_i32_0 = arith.constant 0 : i32
    %c0_i32_1 = arith.constant 0 : i32
    return %c0_i32, %c0_i32_0 : i32, i32
  }
  func.func @transform_5(%arg0: i32) -> (i32, i32) {
    %c0_i32 = arith.constant 0 : i32
    %c0_i32_0 = arith.constant 0 : i32
    %c0_i32_1 = arith.constant 0 : i32
    return %c0_i32, %c0_i32_0 : i32, i32
  }
  func.func @transform_6(%arg0: i32) -> (i32, i32) {
    %c0_i32 = arith.constant 0 : i32
    %c0_i32_0 = arith.constant 0 : i32
    %c0_i32_1 = arith.constant 0 : i32
    return %c0_i32, %c0_i32_0 : i32, i32
  }
  func.func @transform_7(%arg0: i32) -> (i32, i32) {
    %c0_i32 = arith.constant 0 : i32
    %c0_i32_0 = arith.constant 0 : i32
    %c0_i32_1 = arith.constant 0 : i32
    return %c0_i32, %c0_i32_0 : i32, i32
  }
  func.func @transform_8(%arg0: i32) -> (i32, i32) {
    %c0_i32 = arith.constant 0 : i32
    %c0_i32_0 = arith.constant 0 : i32
    %c0_i32_1 = arith.constant 0 : i32
    return %c0_i32, %c0_i32_0 : i32, i32
  }
  func.func @transform_9(%arg0: i32) -> (i32, i32) {
    %c0_i32 = arith.constant 0 : i32
    %c0_i32_0 = arith.constant 0 : i32
    return %c0_i32, %arg0 : i32, i32
  }
}

</mosaic_0001>

<bundles_post_ra>
// kernel: critic_forward.1
= control target key start
LH: loop header
LB: loop body
LE: loop exit
PB: predicated region body
PF: predicated region fallthrough
CT: control target
= control target key end

     0   :  { %15 = vsyncpa [#allocation4], 0  ;;  %s705_s0 = inlined_call_operand.vmem [shape: f32[8,48], index: 0, kind: input, shape index: {}]   ;;  %s706_s1 = inlined_call_operand.vmem [shape: f32[8,4], index: 1, kind: input, shape index: {}]   ;;  %s707_s2 = inlined_call_operand.hbm [shape: f32[48,256], index: 2, kind: input, shape index: {}]   ;;  %s708_s3 = inlined_call_operand.hbm [shape: f32[1,256], index: 3, kind: input, shape index: {}]   ;;  %s709_s4 = inlined_call_operand.hbm [shape: f32[256,128], index: 4, kind: input, shape index: {}]   ;;  %s710_s5 = inlined_call_operand.vmem [shape: f32[4,128], index: 5, kind: input, shape index: {}]   ;;  %s711_s6 = inlined_call_operand.vmem [shape: f32[1,128], index: 6, kind: input, shape index: {}]   ;;  %s712_s7 = inlined_call_operand.vmem [shape: f32[8,128], index: 7, kind: input, shape index: {}]   ;;  %s713_s8 = inlined_call_operand.<no memory space> [shape: f32[1,1], index: 8, kind: input, shape index: {}]   ;;  %s714_s9 = inlined_call_operand.hbm [shape: f32[1,8], index: 9, kind: output, shape index: {}]  }
   0x1   :  { %16 = vsyncpa [#allocation7], 0 }
   0x2   :  { %17 = vsyncpa [#allocation5], 0  ;;  %s608_s30 = smov [#allocation6]   ;;  %s609_s11 = smov [#allocation3]  }
   0x3   :  { %s40_s10 = sshll.u32 %s608_s30, 4  ;;  %s27_s12 = sshll.u32 %s609_s11, 4  ;;  %s41_s10 = int_to_ptr.vmem [resolvable:$true] %s40_s10  ;;  %s28_s12 = int_to_ptr.vmem [resolvable:$true] %s27_s12 }
   0x4   :  { %s530_s13 = scalar_lea.vmem %s41_s10, 32  ;;  %p535_p1 = scmp.lt.s32.totalorder %s41_s10, %s41_s10 }
   0x5   :  { %p531_p0 = scmp.ne.s32.totalorder %s41_s10, %s530_s13  ;;  %p536_p2 = scmp.lt.s32.totalorder %s530_s13, %s530_s13 }
   0x7   :  { %p537_p3 = por %p536_p2, %p535_p1 }
   0x9   :  { %p538_p4 = pnand %p537_p3, %p531_p0 }
   0xb   :  { %541 = shalt.err (!%p538_p4)
}
   0xc   :  { %43 = dma.hbm_to_vmem [thread:$0]  %s708_s3, 32, %s41_s10, [#allocation7]  }
   0xd   :  { %s550_s16 = scalar_lea.vmem %s28_s12, 1536  ;;  %p555_p6 = scmp.lt.s32.totalorder %s28_s12, %s28_s12 }
   0xe   :  { %p551_p5 = scmp.ne.s32.totalorder %s28_s12, %s550_s16  ;;  %p556_p7 = scmp.lt.s32.totalorder %s550_s16, %s550_s16 }
  0x10   :  { %p557_p8 = por %p556_p7, %p555_p6 }
  0x12   :  { %p558_p9 = pnand %p557_p8, %p551_p5 }
  0x14   :  { %561 = shalt.err (!%p558_p9)
}
  0x15   :  { %s610_s17 = smov 256   ;;  %s611_s18 = smov 16  }
  0x16   :  { %33 = dma.hbm_to_vmem [thread:$0]  %s707_s2, 1536, %s28_s12, [#allocation4], %s610_s17, %s610_s17, %s611_s18  }
  0x17   :  { %s612_s21 = smov [#allocation8]  }
  0x18   :  { %s49_s22 = sshll.u32 %s612_s21, 4  ;;  %s50_s22 = int_to_ptr.vmem [resolvable:$true] %s49_s22 }
  0x19   :  { %s570_s23 = scalar_lea.vmem %s50_s22, 4096  ;;  %p575_p11 = scmp.lt.s32.totalorder %s50_s22, %s50_s22 }
  0x1a   :  { %p571_p10 = scmp.ne.s32.totalorder %s50_s22, %s570_s23  ;;  %p576_p12 = scmp.lt.s32.totalorder %s570_s23, %s570_s23 }
  0x1c   :  { %p577_p13 = por %p576_p12, %p575_p11 }
  0x1e   :  { %p578_p0 = pnand %p577_p13, %p571_p10 }
  0x20   :  { %581 = shalt.err (!%p578_p0)
}
  0x21   :  { %s613_s3 = smov 128   ;;  %s614_s24 = smov 8  }
  0x22   :  { %55 = dma.hbm_to_vmem [thread:$0]  %s709_s4, 4096, %s50_s22, [#allocation7], %s613_s3, %s613_s3, %s614_s24  }
  0x23   :  { %602 = dma.done.wait [#allocation4], 1536  }
  0x24   :  { %603 = vsyncadd [#allocation4], 4294965760 }
  0x25   :  { %604 = dma.done.wait [#allocation7], 4128  }
  0x26   :  { %605 = vsyncadd [#allocation7], 4294963168  ;;  %v615_v0 = vmov 0.0   ;;  %v85_v1 = vld [vmem:[#allocation3 + $0x58] sm:$0xff]  ;;  %v84_v2 = vld [vmem:[#allocation3 + $0x50] sm:$0xff]  ;;  %vm98_vm0 = vcmask 392192   ;;  %v88_v51 = vlaneseq }
  0x27   :  { %166 = vmatprep.mubr.f32.mxu0 %v615_v0  ;;  %v83_v3 = vld [vmem:[#allocation3 + $0x48] sm:$0xff]  ;;  %122 = vmatprep.subr.mxu0 %v85_v1  ;;  %v82_v4 = vld [vmem:[#allocation3 + $0x40] sm:$0xff]  ;;  %v81_v5 = vld [vmem:[#allocation3 + $0x38] sm:$0xff]  ;;  %v616_v47 = vmov 0   ;;  %v617_v48 = vmov 2   ;;  %v618_v49 = vmov 1  }
  0x28   :  { %123 = vmatpush1.msra.mxu0 %v84_v2  ;;  %v80_v6 = vld [vmem:[#allocation3 + $0x30] sm:$0xff]  ;;  %v79_v7 = vld [vmem:[#allocation3 + $0x28] sm:$0xff]  ;;  %v226_v8 = vld [vmem:[#allocation8 + $0xf8] sm:$0xff]  ;;  %511 = vset.pattern.permute.xlu0 %v616_v47  ;;  %v619_v50 = vmov 3   ;;  %v89_v52 = vshrl.u32 %v88_v51, 7  ;;  %vm620_vm5 = vmmov 0  }
  0x29   :  { %124 = vmatprep.subr.mxu0 %v83_v3  ;;  %v210_v9 = vld [vmem:[#allocation8 + $0x78] sm:$0xff]  ;;  %455 = vmatprep.subr.mxu1 %v226_v8  ;;  %v225_v11 = vld [vmem:[#allocation8 + $0xf0] sm:$0xff]  ;;  %v224_v14 = vld [vmem:[#allocation8 + $0xe8] sm:$0xff]  ;;  %s621_s12 = smov [#allocation9]   ;;  %vm432_vm8 = vcmask 57344  }
  0x2a   :  { %125 = vmatpush1.msra.mxu0 %v82_v4  ;;  %v78_v10 = vld [vmem:[#allocation3 + $0x20] sm:$0xff]  ;;  %v209_v12 = vld [vmem:[#allocation8 + $0x70] sm:$0xff]  ;;  %456 = vmatpush3.msra.mxu1 %v210_v9  ;;  %v208_v16 = vld [vmem:[#allocation8 + $0x68] sm:$0xff]  ;;  %v90_v53 = vsub.s32 0, %v89_v52  ;;  %v94_v55 = vsub.s32 1, %v89_v52  ;;  %s440_s13 = sshll.u32 %s621_s12, 4  ;;  %s441_s13 = int_to_ptr.vmem [resolvable:$true] %s440_s13 }
  0x2b   :  { %126 = vmatprep.subr.mxu0 %v81_v5  ;;  %v77_v13 = vld [vmem:[#allocation3 + $0x18] sm:$0xff]  ;;  %v76_v15 = vld [vmem:[#allocation3 + $0x10] sm:$0xff]  ;;  %457 = vmatprep.subr.mxu1 %v225_v11  ;;  %v75_v17 = vld [vmem:[#allocation3 + $0x8] sm:$0xff]  ;;  %s582_s14 = scalar_lea.vmem %s441_s13, 16  ;;  %s586_s15 = scalar_lea.vmem %s441_s13, 32 }
  0x2c   :  { %127 = vmatpush1.msra.mxu0 %v80_v6  ;;  %458 = vmatpush3.msra.mxu1 %v209_v12  ;;  %v74_v18 = vld [vmem:[#allocation3] sm:$0xff]  ;;  %v221_v24 = vld [vmem:[#allocation8 + $0xd0] sm:$0xff]  ;;  %v220_v26 = vld [vmem:[#allocation8 + $0xc8] sm:$0xff]  ;;  %p583_p1 = scmp.ne.s32.totalorder %s441_s13, %s582_s14  ;;  %p587_p2 = scmp.lt.s32.totalorder %s441_s13, %s441_s13 }
  0x2d   :  { %128 = vmatprep.subr.mxu0 %v79_v7  ;;  %459 = vmatprep.subr.mxu1 %v224_v14  ;;  %v73_v19 = vld [vmem:[%s705_s0] sm:$0xff]  ;;  %v205_v25 = vld [vmem:[#allocation8 + $0x50] sm:$0xff]  ;;  %v204_v27 = vld [vmem:[#allocation8 + $0x48] sm:$0xff]  ;;  %p588_p3 = scmp.lt.s32.totalorder %s586_s15, %s582_s14 }
  0x2e   :  { %129 = vmatpush1.msra.mxu0 %v78_v10  ;;  %460 = vmatpush3.msra.mxu1 %v208_v16  ;;  %v223_v20 = vld [vmem:[#allocation8 + $0xe0] sm:$0xff]  ;;  %v222_v22 = vld [vmem:[#allocation8 + $0xd8] sm:$0xff]  ;;  %v217_v32 = vld [vmem:[#allocation8 + $0xb0] sm:$0xff] }
  0x2f   :  { %130 = vmatprep.subr.mxu0 %v77_v13  ;;  %461 = vmatprep.subr.mxu1 %v223_v20  ;;  %v207_v21 = vld [vmem:[#allocation8 + $0x60] sm:$0xff]  ;;  %v206_v23 = vld [vmem:[#allocation8 + $0x58] sm:$0xff]  ;;  %v201_v33 = vld [vmem:[#allocation8 + $0x30] sm:$0xff]  ;;  %p589_p4 = por %p588_p3, %p587_p2 }
  0x30   :  { %131 = vmatpush1.msra.mxu0 %v76_v15  ;;  %462 = vmatpush3.msra.mxu1 %v207_v21  ;;  %v219_v28 = vld [vmem:[#allocation8 + $0xc0] sm:$0xff]  ;;  %v218_v30 = vld [vmem:[#allocation8 + $0xb8] sm:$0xff]  ;;  %v216_v34 = vld [vmem:[#allocation8 + $0xa8] sm:$0xff]  ;;  %v325_v21 = vsub.s32 2, %v89_v52 }
  0x31   :  { %132 = vmatprep.subr.mxu0 %v75_v17  ;;  %463 = vmatprep.subr.mxu1 %v222_v22  ;;  %v203_v29 = vld [vmem:[#allocation8 + $0x40] sm:$0xff]  ;;  %v202_v31 = vld [vmem:[#allocation8 + $0x38] sm:$0xff]  ;;  %v200_v35 = vld [vmem:[#allocation8 + $0x28] sm:$0xff]  ;;  %p590_p5 = pnand %p589_p4, %p583_p1 }
  0x32   :  { %133 = vmatpush1.msra.mxu0 %v74_v18  ;;  %464 = vmatpush3.msra.mxu1 %v206_v23  ;;  %v215_v36 = vld [vmem:[#allocation8 + $0xa0] sm:$0xff]  ;;  %v214_v38 = vld [vmem:[#allocation8 + $0x98] sm:$0xff]  ;;  %v213_v40 = vld [vmem:[#allocation8 + $0x90] sm:$0xff]  ;;  %v335_v23 = vsub.s32 3, %v89_v52 }
  0x33   :  { %450 = vmatmul.mubr.msk.f32.vlgmr.msra.gmra.mxu0 %vm98_vm0, %v73_v19  ;;  %492 = vmatprep.subr.mxu0 %v615_v0  ;;  %v199_v37 = vld [vmem:[#allocation8 + $0x20] sm:$0xff]  ;;  %v198_v39 = vld [vmem:[#allocation8 + $0x18] sm:$0xff]  ;;  %v197_v41 = vld [vmem:[#allocation8 + $0x10] sm:$0xff] }
  0x34   :  { %465 = vmatprep.subr.mxu1 %v221_v24  ;;  %v212_v42 = vld [vmem:[#allocation8 + $0x88] sm:$0xff]  ;;  %v211_v44 = vld [vmem:[#allocation8 + $0x80] sm:$0xff]  ;;  %513 = vset.pattern.permute.xlu1 %v617_v48  ;;  %v86_v54 = vld [vmem:[#allocation6] sm:$0x3] }
  0x35   :  { %466 = vmatpush3.msra.mxu1 %v205_v25  ;;  %v196_v43 = vld [vmem:[#allocation8 + $0x8] sm:$0xff]  ;;  %v195_v45 = vld [vmem:[#allocation8] sm:$0xff]  ;;  %v91_v56 = vrot.slane %v86_v54, %v90_v53  ;;  %v95_v57 = vrot.slane %v86_v54, %v94_v55  ;;  %494 = vmatprep.mubr.msk.f32.mxu0 %vm620_vm5, %v615_v0 }
  0x36   :  { %467 = vmatprep.subr.mxu1 %v220_v26  ;;  %v227_v46 = vld [vmem:[%s706_s1] sm:$0xff] }
  0x37   :  { %468 = vmatpush3.msra.mxu1 %v204_v27  ;;  %231 = vperm.xlu0 %511, %v227_v46   ;;  %v228_v18 = vld [vmem:[%s710_s5] sm:$0xf] }
  0x38   :  { %469 = vmatprep.subr.mxu1 %v219_v28  ;;  %320 = vperm.xlu1 %513, %v227_v46   ;;  %v237_v19 = vrot.slane %v228_v18, %v90_v53  ;;  %v316_v22 = vrot.slane %v228_v18, %v94_v55 }
  0x39   :  { %470 = vmatpush3.msra.mxu1 %v203_v29  ;;  %v326_v29 = vrot.slane %v228_v18, %v325_v21 }
  0x3a   :  { %471 = vmatprep.subr.mxu1 %v218_v30 }
  0x3b   :  { %472 = vmatpush3.msra.mxu1 %v202_v31  ;;  %512 = vset.pattern.permute.xlu0 %v618_v49  ;;  %v336_v31 = vrot.slane %v228_v18, %v335_v23  ;;  %v358_v49 = vld [vmem:[%s712_s7] sm:$0xff] }
  0x3c   :  { %473 = vmatprep.subr.mxu1 %v217_v32  ;;  %514 = vset.pattern.permute.xlu1 %v619_v50 }
  0x3d   :  { %474 = vmatpush3.msra.mxu1 %v201_v33  ;;  %310 = vperm.xlu0 %512, %v227_v46  }
  0x3e   :  { %475 = vmatprep.subr.mxu1 %v216_v34  ;;  %330 = vperm.xlu1 %514, %v227_v46  }
  0x3f   :  { %476 = vmatpush3.msra.mxu1 %v200_v35 }
  0x40   :  { %477 = vmatprep.subr.mxu1 %v215_v36 }
  0x41   :  { %478 = vmatpush3.msra.mxu1 %v199_v37  ;;  %515 = vset.pattern.permute.xlu0 %v619_v50  ;;  %v453_v37 = vld [vmem:[%s711_s6] ss:$0 sm:$0xff]  ;;  %v430_v50 = vstv %s713_s8 }
  0x42   :  { %479 = vmatprep.subr.mxu1 %v214_v38 }
  0x43   :  { %480 = vmatpush3.msra.mxu1 %v198_v39 }
  0x44   :  { %481 = vmatprep.subr.mxu1 %v213_v40 }
  0x45   :  { %482 = vmatpush3.msra.mxu1 %v197_v41 }
  0x46   :  { %483 = vmatprep.subr.mxu1 %v212_v42 }
  0x47   :  { %484 = vmatpush3.msra.mxu1 %v196_v43 }
  0x48   :  { %485 = vmatprep.subr.mxu1 %v211_v44 }
  0x49   :  { %486 = vmatpush3.msra.mxu1 %v195_v45 }
  0xb2   :  { %v232_v17 = vpop.permute.xlu0 %231 }
  0xb3   :  { %v321_v20 = vpop.permute.xlu1 %320  ;;  %v238_v26 = vmul.f32 %v237_v19, %v232_v17 }
  0xb4   :  { %v327_v33 = vmul.f32 %v326_v29, %v321_v20 }
  0xb8   :  { %v311_v25 = vpop.permute.xlu0 %310 }
  0xb9   :  { %v317_v30 = vmul.f32 %v316_v22, %v311_v25  ;;  %v331_v32 = vpop.permute.xlu1 %330 }
  0xba   :  { %v337_v35 = vmul.f32 %v336_v31, %v331_v32 }
  0xf3   :  { %v168_v58 = vpop.f32.mrf.mxu0 }
  0xf4   :  { %v169_v59 = vadd.f32 %v168_v58, %v91_v56 }
  0xf5   :  { %v170_v60 = vpop.f32.mrf.mxu0 }
  0xf6   :  { %v171_v61 = vadd.f32 %v170_v60, %v95_v57  ;;  %v183_v62 = vmul.f32 1.442695, %v169_v59  ;;  %v177_v1 = vmul.f32 0.5, %v169_v59  ;;  %v173_v5 = vand.u32 2147483647, %v169_v59 }
  0xf7   :  { %vm191_vm4 = vcmp.gt.f32.partialorder %v169_v59, 0.0 }
  0xf8   :  { %v185_v63 = vmul.f32 1.442695, %v171_v61  ;;  %516 = vpow2.f32 %v183_v62  ;;  %v178_v2 = vmul.f32 0.5, %v171_v61  ;;  %v179_v3 = vmul.f32 %v177_v1, %v169_v59 }
  0xf9   :  { %v174_v6 = vand.u32 2147483647, %v171_v61  ;;  %vm175_vm1 = vcmp.lt.f32.partialorder %v173_v5, 0.001  ;;  %vm192_vm3 = vcmp.gt.f32.partialorder %v171_v61, 0.0 }
  0xfa   :  { %518 = vpow2.f32 %v185_v63  ;;  %v180_v4 = vmul.f32 %v178_v2, %v171_v61  ;;  %v181_v9 = vadd.f32 %v179_v3, %v169_v59 }
  0xfb   :  { %vm176_vm2 = vcmp.lt.f32.partialorder %v174_v6, 0.001 }
  0xfc   :  { %v182_v11 = vadd.f32 %v180_v4, %v171_v61 }
 0x105   :  { %v517_v7 = vpop.eup %516 }
 0x106   :  { %v451_v10 = vadd.f32 -1.0, %v517_v7 }
 0x107   :  { %v519_v8 = vpop.eup %518 }
 0x108   :  { %v452_v12 = vadd.f32 -1.0, %v519_v8  ;;  %v189_v13 = vsel %vm175_vm1, %v181_v9, %v451_v10 }
 0x109   :  { %v193_v16 = vsel %vm191_vm4, %v169_v59, %v189_v13 }
 0x10a   :  { %v190_v14 = vsel %vm176_vm2, %v182_v11, %v452_v12 }
 0x10b   :  { %v194_v15 = vsel %vm192_vm3, %v171_v61, %v190_v14 }
 0x10c   :  { %303 = vmatprep.mubr.f32.mxu1 %v194_v15 }
 0x10d   :  { %304 = vmatmul.mubr.f32.vlgmr.msra.gmra.mxu1 %v193_v16 }
 0x1cd   :  { %v487_v24 = vpop.f32.mrf.mxu1 }
 0x1cf   :  { %v488_v27 = vpop.f32.mrf.mxu1 }
 0x1d0   :  { %v489_v28 = vadd.f32 %v488_v27, %v487_v24 }
 0x1d2   :  { %v306_v0 = vadd.f32 %v489_v28, %v238_v26 }
 0x1d4   :  { %v318_v34 = vadd.f32 %v317_v30, %v306_v0 }
 0x1d6   :  { %v328_v36 = vadd.f32 %v327_v33, %v318_v34 }
 0x1d8   :  { %v338_v38 = vadd.f32 %v337_v35, %v328_v36 }
 0x1da   :  { %v346_v39 = vadd.f32 %v453_v37, %v338_v38 }
 0x1dc   :  { %v352_v40 = vmul.f32 1.442695, %v346_v39  ;;  %v349_v41 = vmul.f32 0.5, %v346_v39  ;;  %v347_v43 = vand.u32 2147483647, %v346_v39  ;;  %vm356_vm7 = vcmp.gt.f32.partialorder %v346_v39, 0.0 }
 0x1de   :  { %520 = vpow2.f32 %v352_v40  ;;  %v350_v42 = vmul.f32 %v349_v41, %v346_v39  ;;  %vm348_vm6 = vcmp.lt.f32.partialorder %v347_v43, 0.001 }
 0x1e0   :  { %v351_v45 = vadd.f32 %v350_v42, %v346_v39 }
 0x1eb   :  { %v521_v44 = vpop.eup %520 }
 0x1ec   :  { %v454_v46 = vadd.f32 -1.0, %v521_v44 }
 0x1ee   :  { %v355_v47 = vsel %vm348_vm6, %v351_v45, %v454_v46 }
 0x1ef   :  { %v357_v48 = vsel %vm356_vm7, %v346_v39, %v355_v47 }
 0x1f0   :  { %493 = vmatpush3.xpose.msra.mxu0 %v357_v48 }
 0x1f3   :  { %495 = vmatmul.mubr.f32.vlgmr.msra.gmra.mxu0 %v358_v49 }
 0x2b3   :  { %v425_v51 = vpop.f32.mrf.mxu0 }
 0x2b4   :  { %v431_v52 = vadd.f32 %v430_v50, %v425_v51 }
 0x2b5   :  { %v496_v53 = vpop.f32.mrf.mxu0 }
 0x2b6   :  { %433 = vst.msk [vmem:[#allocation9] sm:$0x1] %vm432_vm8, %v431_v52 }
 0x2b7   :  { %593 = shalt.err (!%p590_p5)
}
 0x2b8   :  { %443 = dma.vmem_to_hbm [thread:$0]  %s441_s13, 16, %s714_s9, [#allocation5]  }
 0x2b9   :  { %606 = dma.done.wait [#allocation5], 16  }
 0x2ba   :  { %607 = vsyncadd [#allocation5], 4294967280 }
 0x2bb   :  { %447 = vsyncpa [#allocation4], 1 }
 0x2bc   :  { %448 = vsyncpa [#allocation7], 1 }
 0x2bd   :  { %449 = vsyncpa [#allocation5], 1 }

</bundles_post_ra>
